<compile_context>
chip_gen: v5e
topology: v5e:2x2
jax: 0.10.0
libtpu: 0.0.40
codegen_flags: <defaults>
</compile_context>

<pallas_src>
import functools

import jax
import jax.numpy as jnp
from jax import lax
from jax.experimental import pallas as pl
from jax.experimental.pallas import tpu as pltpu

LEAKY_SLOPE = 0.01   # nn.LeakyReLU default negative_slope
BN_EPS = 1e-5        # nn.BatchNorm2d default eps

# Tile-size targets (bf16 inputs, fp32 accumulator).
TM, TK, TN = 512, 512, 512


def _round_up(x, m):
    return ((x + m - 1) // m) * m


def _pad2d(a, rows, cols):
    r, c = a.shape
    if r == rows and c == cols:
        return a
    return jnp.pad(a, ((0, rows - r), (0, cols - c)))


def _pick_tile_m(M):
    # Large layers: 512 (a 256 multiple -> full-width v6e/v7x MXU feeds, and
    # M >= 1024 gives >= 2 parallel M tiles for megacore).  Small layers: one
    # sublane-aligned tile with minimal padding.
    return TM if M >= TM else _round_up(M, 8)


def _pick_tile_n(N):
    return TN if N >= TN else _round_up(N, 128)


def _pick_tile_k(K):
    """Pad K only to a 128 multiple; pick tk dividing Kp (<= TK if multi-step)."""
    Kp = _round_up(K, 128)
    if Kp <= 2 * TK:
        return Kp, Kp                      # single K step
    best = 128                             # 128 always divides Kp
    d = 256
    while d <= TK:
        if Kp % d == 0:
            best = d
        d += 128
    return best, Kp


def _vmem_limit(*tile_bytes):
    # Double-buffered pipeline tiles + generous headroom, kept well under the
    # 64 MiB/TC physical VMEM of v7x (v5e/v6e have 128 MiB).
    need = 2 * sum(int(t) for t in tile_bytes) + (8 << 20)
    return max(32 << 20, min(need, 56 << 20))


def _compiler_params(vmem_bytes):
    return pltpu.CompilerParams(
        dimension_semantics=("parallel", "parallel", "arbitrary"),
        vmem_limit_bytes=int(vmem_bytes),
    )


# --------------------------------------------------------------------------
# Pallas kernels (tiled matmul with fused epilogues)
# --------------------------------------------------------------------------
def _mm_bias_act_kernel(x_ref, w_ref, b_ref, o_ref, acc_ref, *, act, slope):
    """acc += x @ w over K; finalize: out = leaky_relu?(acc + bias)."""
    @pl.when(pl.program_id(2) == 0)
    def _init():
        acc_ref[...] = jnp.zeros_like(acc_ref)

    acc_ref[...] += jnp.dot(x_ref[...], w_ref[...],
                            preferred_element_type=jnp.float32)

    @pl.when(pl.program_id(2) == pl.num_programs(2) - 1)
    def _fin():
        y = acc_ref[...] + b_ref[...]
        if act:
            y = jnp.where(y > 0, y, slope * y)
        o_ref[...] = y.astype(o_ref.dtype)


def _mm_bias_res_act_kernel(x_ref, w_ref, b_ref, r_ref, o_ref, acc_ref, *,
                            slope):
    """acc += x @ w; finalize: out = leaky_relu(acc + bias + residual)."""
    @pl.when(pl.program_id(2) == 0)
    def _init():
        acc_ref[...] = jnp.zeros_like(acc_ref)

    acc_ref[...] += jnp.dot(x_ref[...], w_ref[...],
                            preferred_element_type=jnp.float32)

    @pl.when(pl.program_id(2) == pl.num_programs(2) - 1)
    def _fin():
        y = acc_ref[...] + b_ref[...] + r_ref[...].astype(jnp.float32)
        y = jnp.where(y > 0, y, slope * y)
        o_ref[...] = y.astype(o_ref.dtype)


def _mm_dual_bias_act_kernel(x_ref, w_ref, xs_ref, ws_ref, b_ref, o_ref,
                             acc_ref, *, slope):
    """Fused projection shortcut:
    acc(k==0) = xs @ ws ; acc += x @ w ; out = leaky_relu(acc + bias)."""
    @pl.when(pl.program_id(2) == 0)
    def _init():
        acc_ref[...] = jnp.dot(xs_ref[...], ws_ref[...],
                               preferred_element_type=jnp.float32)

    acc_ref[...] += jnp.dot(x_ref[...], w_ref[...],
                            preferred_element_type=jnp.float32)

    @pl.when(pl.program_id(2) == pl.num_programs(2) - 1)
    def _fin():
        y = acc_ref[...] + b_ref[...]
        y = jnp.where(y > 0, y, slope * y)
        o_ref[...] = y.astype(o_ref.dtype)


# --------------------------------------------------------------------------
# pallas_call drivers (lane-dense padding, tiled grid, fp32 acc scratch)
# --------------------------------------------------------------------------
def matmul_bias_act(x2d, w2d, bias, *, act, out_rows, out_cols,
                    slope=LEAKY_SLOPE, out_dtype=jnp.bfloat16):
    """out = leaky_relu?(x @ w + bias); bf16 in, fp32 acc, bf16 out."""
    M, K = x2d.shape
    _, N = w2d.shape
    tm, tn = _pick_tile_m(M), _pick_tile_n(N)
    tk, Kp = _pick_tile_k(K)
    Mp, Np = _round_up(M, tm), _round_up(N, tn)
    xp = _pad2d(x2d.astype(jnp.bfloat16), Mp, Kp)
    wp = _pad2d(w2d.astype(jnp.bfloat16), Kp, Np)
    bp = _pad2d(bias.reshape(1, -1).astype(jnp.float32), 1, Np)
    grid = (Mp // tm, Np // tn, Kp // tk)
    vmem = _vmem_limit(tm * tk * 2, tk * tn * 2, tm * tn * 2, tm * tn * 4)
    kernel = functools.partial(_mm_bias_act_kernel, act=act, slope=slope)
    out = pl.pallas_call(
        kernel,
        out_shape=jax.ShapeDtypeStruct((Mp, Np), out_dtype),
        grid=grid,
        in_specs=[
            pl.BlockSpec((tm, tk), lambda i, j, k: (i, k)),
            pl.BlockSpec((tk, tn), lambda i, j, k: (k, j)),
            pl.BlockSpec((1, tn), lambda i, j, k: (0, j)),
        ],
        out_specs=pl.BlockSpec((tm, tn), lambda i, j, k: (i, j)),
        scratch_shapes=[pltpu.VMEM((tm, tn), jnp.float32)],
        compiler_params=_compiler_params(vmem),
    )(xp, wp, bp)
    return out[:out_rows, :out_cols]


def matmul_bias_res_act(x2d, w2d, bias, residual, *, out_rows, out_cols,
                        slope=LEAKY_SLOPE, out_dtype=jnp.bfloat16):
    """out = leaky_relu(x @ w + bias + residual) (identity-shortcut path)."""
    M, K = x2d.shape
    _, N = w2d.shape
    tm, tn = _pick_tile_m(M), _pick_tile_n(N)
    tk, Kp = _pick_tile_k(K)
    Mp, Np = _round_up(M, tm), _round_up(N, tn)
    xp = _pad2d(x2d.astype(jnp.bfloat16), Mp, Kp)
    wp = _pad2d(w2d.astype(jnp.bfloat16), Kp, Np)
    bp = _pad2d(bias.reshape(1, -1).astype(jnp.float32), 1, Np)
    rp = _pad2d(residual.astype(jnp.bfloat16), Mp, Np)   # bf16 residual stream
    grid = (Mp // tm, Np // tn, Kp // tk)
    vmem = _vmem_limit(tm * tk * 2, tk * tn * 2, 2 * tm * tn * 2, tm * tn * 4)
    kernel = functools.partial(_mm_bias_res_act_kernel, slope=slope)
    out = pl.pallas_call(
        kernel,
        out_shape=jax.ShapeDtypeStruct((Mp, Np), out_dtype),
        grid=grid,
        in_specs=[
            pl.BlockSpec((tm, tk), lambda i, j, k: (i, k)),
            pl.BlockSpec((tk, tn), lambda i, j, k: (k, j)),
            pl.BlockSpec((1, tn), lambda i, j, k: (0, j)),
            pl.BlockSpec((tm, tn), lambda i, j, k: (i, j)),
        ],
        out_specs=pl.BlockSpec((tm, tn), lambda i, j, k: (i, j)),
        scratch_shapes=[pltpu.VMEM((tm, tn), jnp.float32)],
        compiler_params=_compiler_params(vmem),
    )(xp, wp, bp, rp)
    return out[:out_rows, :out_cols]


def matmul_dual_bias_act(x2d, w2d, xs2d, ws2d, bias, *, out_rows, out_cols,
                         slope=LEAKY_SLOPE, out_dtype=jnp.bfloat16):
    """out = leaky_relu(x @ w + xs @ ws + bias) (fused projection shortcut)."""
    M, K = x2d.shape
    _, N = w2d.shape
    Ms, Ks = xs2d.shape
    assert Ms == M and ws2d.shape == (Ks, N)
    tm, tn = _pick_tile_m(M), _pick_tile_n(N)
    tk, Kp = _pick_tile_k(K)
    ks_p = _round_up(Ks, 128)
    Mp, Np = _round_up(M, tm), _round_up(N, tn)
    xp = _pad2d(x2d.astype(jnp.bfloat16), Mp, Kp)
    wp = _pad2d(w2d.astype(jnp.bfloat16), Kp, Np)
    xsp = _pad2d(xs2d.astype(jnp.bfloat16), Mp, ks_p)
    wsp = _pad2d(ws2d.astype(jnp.bfloat16), ks_p, Np)
    bp = _pad2d(bias.reshape(1, -1).astype(jnp.float32), 1, Np)
    grid = (Mp // tm, Np // tn, Kp // tk)
    vmem = _vmem_limit(tm * tk * 2, tk * tn * 2, tm * ks_p * 2, ks_p * tn * 2,
                       tm * tn * 2, tm * tn * 4)
    kernel = functools.partial(_mm_dual_bias_act_kernel, slope=slope)
    out = pl.pallas_call(
        kernel,
        out_shape=jax.ShapeDtypeStruct((Mp, Np), out_dtype),
        grid=grid,
        in_specs=[
            pl.BlockSpec((tm, tk), lambda i, j, k: (i, k)),
            pl.BlockSpec((tk, tn), lambda i, j, k: (k, j)),
            pl.BlockSpec((tm, ks_p), lambda i, j, k: (i, 0)),
            pl.BlockSpec((ks_p, tn), lambda i, j, k: (0, j)),
            pl.BlockSpec((1, tn), lambda i, j, k: (0, j)),
        ],
        out_specs=pl.BlockSpec((tm, tn), lambda i, j, k: (i, j)),
        scratch_shapes=[pltpu.VMEM((tm, tn), jnp.float32)],
        compiler_params=_compiler_params(vmem),
    )(xp, wp, xsp, wsp, bp)
    return out[:out_rows, :out_cols]


# --------------------------------------------------------------------------
# Plain-JAX glue: im2col, BN folding, parameter init / preparation
# --------------------------------------------------------------------------
def _im2col(x_nhwc, ksize, stride, padding, dtype=jnp.bfloat16):
    """Extract (ksize x ksize) patches -> (N*Ho*Wo, ksize*ksize*C) bf16."""
    N, H, W, C = x_nhwc.shape
    if padding > 0:
        x_nhwc = jnp.pad(
            x_nhwc, ((0, 0), (padding, padding), (padding, padding), (0, 0)))
    Ho = (H + 2 * padding - ksize) // stride + 1
    Wo = (W + 2 * padding - ksize) // stride + 1
    cols = []
    for kh in range(ksize):
        for kw in range(ksize):
            patch = x_nhwc[:, kh:kh + stride * (Ho - 1) + 1:stride,
                              kw:kw + stride * (Wo - 1) + 1:stride, :]
            cols.append(patch)
    patches = jnp.stack(cols, axis=-2)       # (N, Ho, Wo, KH*KW, C)
    cols2d = patches.reshape(N * Ho * Wo, ksize * ksize * C).astype(dtype)
    return cols2d, (N, Ho, Wo)


def _weight_to_matrix(w_oihw):
    """(Cout, Cin, KH, KW) torch layout -> (KH*KW*Cin, Cout)."""
    cout = w_oihw.shape[0]
    return jnp.transpose(w_oihw, (2, 3, 1, 0)).reshape(-1, cout)


def _bn_fold(gamma, beta, mean, var, eps=BN_EPS):
    scale = gamma / jnp.sqrt(var + eps)
    bias = beta - mean * scale
    return scale, bias


def _conv_weight_bn_folded(w_oihw, bn_params, dtype=jnp.bfloat16):
    """Fold BN scale into the weight matrix; return (bf16 W, fp32 bias)."""
    scale, bias = _bn_fold(**bn_params)
    wm = _weight_to_matrix(w_oihw) * scale[None, :]
    return wm.astype(dtype), bias.astype(jnp.float32)


def init_basic_block_params(key, in_channels, out_channels, stride):
    """Deterministic synthetic parameters matching BasicBlock.__init__ shapes."""
    expansion = 1
    cout = out_channels * expansion
    ks = jax.random.split(key, 6)

    def conv_w(k, co, ci, kh, kw):
        fan_in = ci * kh * kw
        std = (2.0 / fan_in) ** 0.5
        return std * jax.random.normal(k, (co, ci, kh, kw), jnp.float32)

    def bn(k, c):
        kg, kb, km, kv = jax.random.split(k, 4)
        return dict(
            gamma=1.0 + 0.1 * jax.random.normal(kg, (c,), jnp.float32),
            beta=0.1 * jax.random.normal(kb, (c,), jnp.float32),
            mean=0.1 * jax.random.normal(km, (c,), jnp.float32),
            var=jnp.abs(jax.random.normal(kv, (c,), jnp.float32)) + 0.5,
        )

    params = dict(
        w1=conv_w(ks[0], out_channels, in_channels, 3, 3),
        bn1=bn(ks[1], out_channels),
        w2=conv_w(ks[2], cout, out_channels, 3, 3),
        bn2=bn(ks[3], cout),
    )
    if stride != 1 or in_channels != cout:
        params["ws"] = conv_w(ks[4], cout, in_channels, 1, 1)
        params["bns"] = bn(ks[5], cout)
    return params


def prepare_basic_block_params(raw, in_channels, out_channels, stride):
    """Fold BN into weight matrices ONCE (hoisted out of the forward path)."""
    cout = out_channels  # expansion = 1
    prep = {}
    prep["w1m"], prep["b1"] = _conv_weight_bn_folded(raw["w1"], raw["bn1"])
    w2m, b2 = _conv_weight_bn_folded(raw["w2"], raw["bn2"])
    prep["w2m"] = w2m
    if stride != 1 or in_channels != cout:
        wsm, bs = _conv_weight_bn_folded(raw["ws"], raw["bns"])
        prep["wsm"] = wsm
        prep["b2"] = b2 + bs          # both biases applied in the fused epilogue
    else:
        prep["b2"] = b2
    return prep


# --------------------------------------------------------------------------
# BasicBlock forward
# --------------------------------------------------------------------------
def basic_block_forward_nhwc(x_nhwc, prep, *, in_channels, out_channels,
                             stride):
    """NHWC in -> NHWC (bf16) out; use this when chaining blocks."""
    cout = out_channels  # expansion = 1
    x = x_nhwc.astype(jnp.bfloat16)   # activations flow as bf16 between kernels

    # conv3x3(stride) + BN1 + LeakyReLU fused into one tiled-matmul kernel.
    cols1, (N, Ho, Wo) = _im2col(x, ksize=3, stride=stride, padding=1)
    M = N * Ho * Wo
    y1 = matmul_bias_act(cols1, prep["w1m"], prep["b1"], act=True,
                         out_rows=M, out_cols=out_channels)
    y1 = y1.reshape(N, Ho, Wo, out_channels)

    # conv3x3(s=1) + BN2 + shortcut-add + LeakyReLU fused into one kernel.
    cols2, _ = _im2col(y1, ksize=3, stride=1, padding=1)

    if stride != 1 or in_channels != cout:
        # Projection shortcut (1x1 conv stride s + BN).  Its im2col is exactly
        # the centre tap (kh=1, kw=1) of cols1 (padding=1 aligns that tap with
        # x[ho*s, wo*s]), so reuse the slice instead of re-extracting patches;
        # the shortcut matmul stays fused in the final kernel's accumulator.
        c0 = 4 * in_channels          # tap index (1*3+1) * Cin
        cols_s = cols1[:, c0:c0 + in_channels]
        out = matmul_dual_bias_act(cols2, prep["w2m"], cols_s, prep["wsm"],
                                   prep["b2"], out_rows=M, out_cols=cout)
    else:
        # Identity shortcut, added (as bf16) in the fused epilogue.
        residual = x.reshape(M, cout)
        out = matmul_bias_res_act(cols2, prep["w2m"], prep["b2"], residual,
                                  out_rows=M, out_cols=cout)
    return out.reshape(N, Ho, Wo, cout)


def basic_block_forward(x_nchw, prep, *, in_channels, out_channels, stride):
    """PyTorch-style NCHW boundary wrapper (converts only at the edges)."""
    x = jnp.transpose(x_nchw, (0, 2, 3, 1))
    out = basic_block_forward_nhwc(x, prep, in_channels=in_channels,
                                   out_channels=out_channels, stride=stride)
    return jnp.transpose(out, (0, 3, 1, 2))


# --------------------------------------------------------------------------
# Plain-JAX fp32 reference (for correctness check)
# --------------------------------------------------------------------------
def basic_block_reference_nhwc(x_nhwc, params, in_channels, out_channels,
                               stride):
    def conv(x, w_oihw, strides, padding):
        w = jnp.transpose(w_oihw, (2, 3, 1, 0))  # HWIO
        return lax.conv_general_dilated(
            x, w, window_strides=strides, padding=padding,
            dimension_numbers=("NHWC", "HWIO", "NHWC"))

    def bn(x, p):
        s, b = _bn_fold(**p)
        return x * s + b

    def lrelu(x):
        return jnp.where(x > 0, x, LEAKY_SLOPE * x)

    x = x_nhwc.astype(jnp.float32)
    y = lrelu(bn(conv(x, params["w1"], (stride, stride), ((1, 1), (1, 1))),
                 params["bn1"]))
    y = bn(conv(y, params["w2"], (1, 1), ((1, 1), (1, 1))), params["bn2"])
    cout = out_channels
    if stride != 1 or in_channels != cout:
        s = bn(conv(x, params["ws"], (stride, stride), ((0, 0), (0, 0))),
               params["bns"])
    else:
        s = x
    return lrelu(y + s)


# --------------------------------------------------------------------------
if __name__ == "__main__":
    key = jax.random.PRNGKey(0)
    k_x, k_p1, k_p2 = jax.random.split(key, 3)

    # Block 1: 4 -> 8 channels, stride 2 (projection shortcut -> dual-dot kernel)
    # Block 2: 8 -> 8 channels, stride 1 (identity shortcut -> residual kernel)
    c_in, c_mid, spatial = 4, 8, 16
    x_nchw = jax.random.normal(k_x, (2, c_in, spatial, spatial), jnp.float32)
    raw1 = init_basic_block_params(k_p1, c_in, c_mid, 2)
    raw2 = init_basic_block_params(k_p2, c_mid, c_mid, 1)

    # BN folding hoisted out of the forward path (done once for inference).
    prep1 = prepare_basic_block_params(raw1, c_in, c_mid, 2)
    prep2 = prepare_basic_block_params(raw2, c_mid, c_mid, 1)

    @jax.jit
    def two_blocks(x_nhwc, p_a, p_b):
        y = basic_block_forward_nhwc(x_nhwc, p_a, in_channels=c_in,
                                     out_channels=c_mid, stride=2)
        return basic_block_forward_nhwc(y, p_b, in_channels=c_mid,
                                        out_channels=c_mid, stride=1)

    # Chain the two blocks in NHWC; convert only at the network boundaries.
    x_nhwc = jnp.transpose(x_nchw, (0, 2, 3, 1))
    y = two_blocks(x_nhwc, prep1, prep2)
    out = jnp.transpose(y, (0, 3, 1, 2)).astype(jnp.float32)
    out = jax.block_until_ready(out)

    # fp32 reference for correctness (conv path is bf16, hence the tolerance).
    r = basic_block_reference_nhwc(x_nhwc, raw1, c_in, c_mid, 2)
    r = basic_block_reference_nhwc(r, raw2, c_mid, c_mid, 1)
    ref = jnp.transpose(r, (0, 3, 1, 2))

    expected_shape = (2, c_mid, spatial // 2, spatial // 2)
    assert out.shape == expected_shape, (out.shape, expected_shape)
    assert jnp.all(jnp.isfinite(out))
    assert jnp.allclose(out, ref, rtol=5e-2, atol=1e-1), (
        "max abs err:", float(jnp.max(jnp.abs(out - ref))))
    print("KERNEL_OK")
</pallas_src>

<mosaic_0001>
module attributes {stable_mosaic.version = 11 : i64} {
  func.func @_mm_bias_act_kernel(%arg0: i32, %arg1: i32, %arg2: i32, %arg3: memref<128x128xbf16, #tpu.memory_space<vmem>>, %arg4: memref<128x128xbf16, #tpu.memory_space<vmem>>, %arg5: memref<1x128xf32, #tpu.memory_space<vmem>>, %arg6: memref<128x128xbf16, #tpu.memory_space<vmem>>, %arg7: memref<128x128xf32, #tpu.memory_space<vmem>>) attributes {dimension_semantics = [#tpu.dimension_semantics<parallel>, #tpu.dimension_semantics<parallel>, #tpu.dimension_semantics<arbitrary>], iteration_bounds = array<i64: 1, 1, 1>, scalar_prefetch = 0 : i64, scratch_operands = 1 : i64, tpu.core_type = #tpu.core_type<tc>, window_params = [{transform_indices = @transform_0, window_bounds = array<i64: 128, 128>}, {transform_indices = @transform_1, window_bounds = array<i64: 128, 128>}, {transform_indices = @transform_2, window_bounds = array<i64: 1, 128>}, {transform_indices = @transform_3, window_bounds = array<i64: 128, 128>}]} {
    %c0_i32 = arith.constant 0 : i32
    %0 = arith.cmpi eq, %arg2, %c0_i32 : i32
    %1 = arith.extui %0 : i1 to i32
    %c0_i32_0 = arith.constant 0 : i32
    %2 = arith.cmpi ne, %1, %c0_i32_0 : i32
    scf.if %2 {
      %cst_10 = arith.constant 0.000000e+00 : f32
      %12 = vector.broadcast %cst_10 : f32 to vector<128x128xf32>
      %c0_11 = arith.constant 0 : index
      %c0_12 = arith.constant 0 : index
      %13 = vector.load %arg7[%c0_11, %c0_12] : memref<128x128xf32, #tpu.memory_space<vmem>>, vector<128x128xf32>
      tpu.vector_store %arg7[%c0_11, %c0_12], %12 {strides = array<i32>} : memref<128x128xf32, #tpu.memory_space<vmem>>, vector<128x128xf32>,
    } else {
    }
    %c0 = arith.constant 0 : index
    %c0_1 = arith.constant 0 : index
    %3 = vector.load %arg7[%c0, %c0_1] : memref<128x128xf32, #tpu.memory_space<vmem>>, vector<128x128xf32>
    %c0_2 = arith.constant 0 : index
    %c0_3 = arith.constant 0 : index
    %4 = vector.load %arg3[%c0_2, %c0_3] : memref<128x128xbf16, #tpu.memory_space<vmem>>, vector<128x128xbf16>
    %c0_4 = arith.constant 0 : index
    %c0_5 = arith.constant 0 : index
    %5 = vector.load %arg4[%c0_4, %c0_5] : memref<128x128xbf16, #tpu.memory_space<vmem>>, vector<128x128xbf16>
    %cst = arith.constant dense<0.000000e+00> : vector<128x128xf32>
    %6 = tpu.matmul %4, %5, %cst {dimension_numbers = #tpu.dot_dimension_numbers<[1], [0], [0], [1], [0, 0, 1, 1], [], []>} : vector<128x128xbf16>, vector<128x128xbf16>, vector<128x128xf32> -> vector<128x128xf32>
    %7 = arith.addf %3, %6 : vector<128x128xf32>
    %c0_6 = arith.constant 0 : index
    %c0_7 = arith.constant 0 : index
    %8 = vector.load %arg7[%c0_6, %c0_7] : memref<128x128xf32, #tpu.memory_space<vmem>>, vector<128x128xf32>
    tpu.vector_store %arg7[%c0_6, %c0_7], %7 {strides = array<i32>} : memref<128x128xf32, #tpu.memory_space<vmem>>, vector<128x128xf32>,
    %c0_i32_8 = arith.constant 0 : i32
    %9 = arith.cmpi eq, %arg2, %c0_i32_8 : i32
    %10 = arith.extui %9 : i1 to i32
    %c0_i32_9 = arith.constant 0 : i32
    %11 = arith.cmpi ne, %10, %c0_i32_9 : i32
    scf.if %11 {
      %c0_10 = arith.constant 0 : index
      %c0_11 = arith.constant 0 : index
      %12 = vector.load %arg7[%c0_10, %c0_11] : memref<128x128xf32, #tpu.memory_space<vmem>>, vector<128x128xf32>
      %c0_12 = arith.constant 0 : index
      %c0_13 = arith.constant 0 : index
      %13 = vector.load %arg5[%c0_12, %c0_13] : memref<1x128xf32, #tpu.memory_space<vmem>>, vector<1x128xf32>
      %14 = vector.broadcast %13 : vector<1x128xf32> to vector<128x128xf32>
      %15 = arith.addf %12, %14 : vector<128x128xf32>
      %cst_14 = arith.constant 0.000000e+00 : f32
      %16 = vector.broadcast %cst_14 : f32 to vector<128x128xf32>
      %17 = arith.cmpf ogt, %15, %16 : vector<128x128xf32>
      %cst_15 = arith.constant 0.00999999977 : f32
      %18 = vector.broadcast %cst_15 : f32 to vector<128x128xf32>
      %19 = arith.mulf %18, %15 : vector<128x128xf32>
      %20 = arith.select %17, %15, %19 : vector<128x128xi1>, vector<128x128xf32>
      %21 = arith.truncf %20 : vector<128x128xf32> to vector<128x128xbf16>
      %c0_16 = arith.constant 0 : index
      %c0_17 = arith.constant 0 : index
      %22 = vector.load %arg6[%c0_16, %c0_17] : memref<128x128xbf16, #tpu.memory_space<vmem>>, vector<128x128xbf16>
      tpu.vector_store %arg6[%c0_16, %c0_17], %21 {strides = array<i32>} : memref<128x128xbf16, #tpu.memory_space<vmem>>, vector<128x128xbf16>,
    } else {
    }
    return
  }
  func.func @transform_0(%arg0: i32, %arg1: i32, %arg2: i32) -> (i32, i32) {
    %c0_i32 = arith.constant 0 : i32
    return %arg0, %arg2 : i32, i32
  }
  func.func @transform_1(%arg0: i32, %arg1: i32, %arg2: i32) -> (i32, i32) {
    %c0_i32 = arith.constant 0 : i32
    return %arg2, %arg1 : i32, i32
  }
  func.func @transform_2(%arg0: i32, %arg1: i32, %arg2: i32) -> (i32, i32) {
    %c0_i32 = arith.constant 0 : i32
    %c0_i32_0 = arith.constant 0 : i32
    return %c0_i32, %arg1 : i32, i32
  }
  func.func @transform_3(%arg0: i32, %arg1: i32, %arg2: i32) -> (i32, i32) {
    %c0_i32 = arith.constant 0 : i32
    return %arg0, %arg1 : i32, i32
  }
}

module attributes {stable_mosaic.version = 11 : i64} {
  func.func @_mm_dual_bias_act_kernel(%arg0: i32, %arg1: i32, %arg2: i32, %arg3: memref<128x128xbf16, #tpu.memory_space<vmem>>, %arg4: memref<128x128xbf16, #tpu.memory_space<vmem>>, %arg5: memref<128x128xbf16, #tpu.memory_space<vmem>>, %arg6: memref<128x128xbf16, #tpu.memory_space<vmem>>, %arg7: memref<1x128xf32, #tpu.memory_space<vmem>>, %arg8: memref<128x128xbf16, #tpu.memory_space<vmem>>, %arg9: memref<128x128xf32, #tpu.memory_space<vmem>>) attributes {dimension_semantics = [#tpu.dimension_semantics<parallel>, #tpu.dimension_semantics<parallel>, #tpu.dimension_semantics<arbitrary>], iteration_bounds = array<i64: 1, 1, 1>, scalar_prefetch = 0 : i64, scratch_operands = 1 : i64, tpu.core_type = #tpu.core_type<tc>, window_params = [{transform_indices = @transform_0, window_bounds = array<i64: 128, 128>}, {transform_indices = @transform_1, window_bounds = array<i64: 128, 128>}, {transform_indices = @transform_2, window_bounds = array<i64: 128, 128>}, {transform_indices = @transform_3, window_bounds = array<i64: 128, 128>}, {transform_indices = @transform_4, window_bounds = array<i64: 1, 128>}, {transform_indices = @transform_5, window_bounds = array<i64: 128, 128>}]} {
    %c0_i32 = arith.constant 0 : i32
    %0 = arith.cmpi eq, %arg2, %c0_i32 : i32
    %1 = arith.extui %0 : i1 to i32
    %c0_i32_0 = arith.constant 0 : i32
    %2 = arith.cmpi ne, %1, %c0_i32_0 : i32
    scf.if %2 {
      %c0_10 = arith.constant 0 : index
      %c0_11 = arith.constant 0 : index
      %12 = vector.load %arg5[%c0_10, %c0_11] : memref<128x128xbf16, #tpu.memory_space<vmem>>, vector<128x128xbf16>
      %c0_12 = arith.constant 0 : index
      %c0_13 = arith.constant 0 : index
      %13 = vector.load %arg6[%c0_12, %c0_13] : memref<128x128xbf16, #tpu.memory_space<vmem>>, vector<128x128xbf16>
      %cst_14 = arith.constant dense<0.000000e+00> : vector<128x128xf32>
      %14 = tpu.matmul %12, %13, %cst_14 {dimension_numbers = #tpu.dot_dimension_numbers<[1], [0], [0], [1], [0, 0, 1, 1], [], []>} : vector<128x128xbf16>, vector<128x128xbf16>, vector<128x128xf32> -> vector<128x128xf32>
      %c0_15 = arith.constant 0 : index
      %c0_16 = arith.constant 0 : index
      %15 = vector.load %arg9[%c0_15, %c0_16] : memref<128x128xf32, #tpu.memory_space<vmem>>, vector<128x128xf32>
      tpu.vector_store %arg9[%c0_15, %c0_16], %14 {strides = array<i32>} : memref<128x128xf32, #tpu.memory_space<vmem>>, vector<128x128xf32>,
    } else {
    }
    %c0 = arith.constant 0 : index
    %c0_1 = arith.constant 0 : index
    %3 = vector.load %arg9[%c0, %c0_1] : memref<128x128xf32, #tpu.memory_space<vmem>>, vector<128x128xf32>
    %c0_2 = arith.constant 0 : index
    %c0_3 = arith.constant 0 : index
    %4 = vector.load %arg3[%c0_2, %c0_3] : memref<128x128xbf16, #tpu.memory_space<vmem>>, vector<128x128xbf16>
    %c0_4 = arith.constant 0 : index
    %c0_5 = arith.constant 0 : index
    %5 = vector.load %arg4[%c0_4, %c0_5] : memref<128x128xbf16, #tpu.memory_space<vmem>>, vector<128x128xbf16>
    %cst = arith.constant dense<0.000000e+00> : vector<128x128xf32>
    %6 = tpu.matmul %4, %5, %cst {dimension_numbers = #tpu.dot_dimension_numbers<[1], [0], [0], [1], [0, 0, 1, 1], [], []>} : vector<128x128xbf16>, vector<128x128xbf16>, vector<128x128xf32> -> vector<128x128xf32>
    %7 = arith.addf %3, %6 : vector<128x128xf32>
    %c0_6 = arith.constant 0 : index
    %c0_7 = arith.constant 0 : index
    %8 = vector.load %arg9[%c0_6, %c0_7] : memref<128x128xf32, #tpu.memory_space<vmem>>, vector<128x128xf32>
    tpu.vector_store %arg9[%c0_6, %c0_7], %7 {strides = array<i32>} : memref<128x128xf32, #tpu.memory_space<vmem>>, vector<128x128xf32>,
    %c0_i32_8 = arith.constant 0 : i32
    %9 = arith.cmpi eq, %arg2, %c0_i32_8 : i32
    %10 = arith.extui %9 : i1 to i32
    %c0_i32_9 = arith.constant 0 : i32
    %11 = arith.cmpi ne, %10, %c0_i32_9 : i32
    scf.if %11 {
      %c0_10 = arith.constant 0 : index
      %c0_11 = arith.constant 0 : index
      %12 = vector.load %arg9[%c0_10, %c0_11] : memref<128x128xf32, #tpu.memory_space<vmem>>, vector<128x128xf32>
      %c0_12 = arith.constant 0 : index
      %c0_13 = arith.constant 0 : index
      %13 = vector.load %arg7[%c0_12, %c0_13] : memref<1x128xf32, #tpu.memory_space<vmem>>, vector<1x128xf32>
      %14 = vector.broadcast %13 : vector<1x128xf32> to vector<128x128xf32>
      %15 = arith.addf %12, %14 : vector<128x128xf32>
      %cst_14 = arith.constant 0.000000e+00 : f32
      %16 = vector.broadcast %cst_14 : f32 to vector<128x128xf32>
      %17 = arith.cmpf ogt, %15, %16 : vector<128x128xf32>
      %cst_15 = arith.constant 0.00999999977 : f32
      %18 = vector.broadcast %cst_15 : f32 to vector<128x128xf32>
      %19 = arith.mulf %18, %15 : vector<128x128xf32>
      %20 = arith.select %17, %15, %19 : vector<128x128xi1>, vector<128x128xf32>
      %21 = arith.truncf %20 : vector<128x128xf32> to vector<128x128xbf16>
      %c0_16 = arith.constant 0 : index
      %c0_17 = arith.constant 0 : index
      %22 = vector.load %arg8[%c0_16, %c0_17] : memref<128x128xbf16, #tpu.memory_space<vmem>>, vector<128x128xbf16>
      tpu.vector_store %arg8[%c0_16, %c0_17], %21 {strides = array<i32>} : memref<128x128xbf16, #tpu.memory_space<vmem>>, vector<128x128xbf16>,
    } else {
    }
    return
  }
  func.func @transform_0(%arg0: i32, %arg1: i32, %arg2: i32) -> (i32, i32) {
    %c0_i32 = arith.constant 0 : i32
    return %arg0, %arg2 : i32, i32
  }
  func.func @transform_1(%arg0: i32, %arg1: i32, %arg2: i32) -> (i32, i32) {
    %c0_i32 = arith.constant 0 : i32
    return %arg2, %arg1 : i32, i32
  }
  func.func @transform_2(%arg0: i32, %arg1: i32, %arg2: i32) -> (i32, i32) {
    %c0_i32 = arith.constant 0 : i32
    %c0_i32_0 = arith.constant 0 : i32
    return %arg0, %c0_i32 : i32, i32
  }
  func.func @transform_3(%arg0: i32, %arg1: i32, %arg2: i32) -> (i32, i32) {
    %c0_i32 = arith.constant 0 : i32
    %c0_i32_0 = arith.constant 0 : i32
    return %c0_i32, %arg1 : i32, i32
  }
  func.func @transform_4(%arg0: i32, %arg1: i32, %arg2: i32) -> (i32, i32) {
    %c0_i32 = arith.constant 0 : i32
    %c0_i32_0 = arith.constant 0 : i32
    return %c0_i32, %arg1 : i32, i32
  }
  func.func @transform_5(%arg0: i32, %arg1: i32, %arg2: i32) -> (i32, i32) {
    %c0_i32 = arith.constant 0 : i32
    return %arg0, %arg1 : i32, i32
  }
}

module attributes {stable_mosaic.version = 11 : i64} {
  func.func @_mm_bias_res_act_kernel(%arg0: i32, %arg1: i32, %arg2: i32, %arg3: memref<128x128xbf16, #tpu.memory_space<vmem>>, %arg4: memref<128x128xbf16, #tpu.memory_space<vmem>>, %arg5: memref<1x128xf32, #tpu.memory_space<vmem>>, %arg6: memref<128x128xbf16, #tpu.memory_space<vmem>>, %arg7: memref<128x128xbf16, #tpu.memory_space<vmem>>, %arg8: memref<128x128xf32, #tpu.memory_space<vmem>>) attributes {dimension_semantics = [#tpu.dimension_semantics<parallel>, #tpu.dimension_semantics<parallel>, #tpu.dimension_semantics<arbitrary>], iteration_bounds = array<i64: 1, 1, 1>, scalar_prefetch = 0 : i64, scratch_operands = 1 : i64, tpu.core_type = #tpu.core_type<tc>, window_params = [{transform_indices = @transform_0, window_bounds = array<i64: 128, 128>}, {transform_indices = @transform_1, window_bounds = array<i64: 128, 128>}, {transform_indices = @transform_2, window_bounds = array<i64: 1, 128>}, {transform_indices = @transform_3, window_bounds = array<i64: 128, 128>}, {transform_indices = @transform_4, window_bounds = array<i64: 128, 128>}]} {
    %c0_i32 = arith.constant 0 : i32
    %0 = arith.cmpi eq, %arg2, %c0_i32 : i32
    %1 = arith.extui %0 : i1 to i32
    %c0_i32_0 = arith.constant 0 : i32
    %2 = arith.cmpi ne, %1, %c0_i32_0 : i32
    scf.if %2 {
      %cst_10 = arith.constant 0.000000e+00 : f32
      %12 = vector.broadcast %cst_10 : f32 to vector<128x128xf32>
      %c0_11 = arith.constant 0 : index
      %c0_12 = arith.constant 0 : index
      %13 = vector.load %arg8[%c0_11, %c0_12] : memref<128x128xf32, #tpu.memory_space<vmem>>, vector<128x128xf32>
      tpu.vector_store %arg8[%c0_11, %c0_12], %12 {strides = array<i32>} : memref<128x128xf32, #tpu.memory_space<vmem>>, vector<128x128xf32>,
    } else {
    }
    %c0 = arith.constant 0 : index
    %c0_1 = arith.constant 0 : index
    %3 = vector.load %arg8[%c0, %c0_1] : memref<128x128xf32, #tpu.memory_space<vmem>>, vector<128x128xf32>
    %c0_2 = arith.constant 0 : index
    %c0_3 = arith.constant 0 : index
    %4 = vector.load %arg3[%c0_2, %c0_3] : memref<128x128xbf16, #tpu.memory_space<vmem>>, vector<128x128xbf16>
    %c0_4 = arith.constant 0 : index
    %c0_5 = arith.constant 0 : index
    %5 = vector.load %arg4[%c0_4, %c0_5] : memref<128x128xbf16, #tpu.memory_space<vmem>>, vector<128x128xbf16>
    %cst = arith.constant dense<0.000000e+00> : vector<128x128xf32>
    %6 = tpu.matmul %4, %5, %cst {dimension_numbers = #tpu.dot_dimension_numbers<[1], [0], [0], [1], [0, 0, 1, 1], [], []>} : vector<128x128xbf16>, vector<128x128xbf16>, vector<128x128xf32> -> vector<128x128xf32>
    %7 = arith.addf %3, %6 : vector<128x128xf32>
    %c0_6 = arith.constant 0 : index
    %c0_7 = arith.constant 0 : index
    %8 = vector.load %arg8[%c0_6, %c0_7] : memref<128x128xf32, #tpu.memory_space<vmem>>, vector<128x128xf32>
    tpu.vector_store %arg8[%c0_6, %c0_7], %7 {strides = array<i32>} : memref<128x128xf32, #tpu.memory_space<vmem>>, vector<128x128xf32>,
    %c0_i32_8 = arith.constant 0 : i32
    %9 = arith.cmpi eq, %arg2, %c0_i32_8 : i32
    %10 = arith.extui %9 : i1 to i32
    %c0_i32_9 = arith.constant 0 : i32
    %11 = arith.cmpi ne, %10, %c0_i32_9 : i32
    scf.if %11 {
      %c0_10 = arith.constant 0 : index
      %c0_11 = arith.constant 0 : index
      %12 = vector.load %arg8[%c0_10, %c0_11] : memref<128x128xf32, #tpu.memory_space<vmem>>, vector<128x128xf32>
      %c0_12 = arith.constant 0 : index
      %c0_13 = arith.constant 0 : index
      %13 = vector.load %arg5[%c0_12, %c0_13] : memref<1x128xf32, #tpu.memory_space<vmem>>, vector<1x128xf32>
      %14 = vector.broadcast %13 : vector<1x128xf32> to vector<128x128xf32>
      %15 = arith.addf %12, %14 : vector<128x128xf32>
      %c0_14 = arith.constant 0 : index
      %c0_15 = arith.constant 0 : index
      %16 = vector.load %arg6[%c0_14, %c0_15] : memref<128x128xbf16, #tpu.memory_space<vmem>>, vector<128x128xbf16>
      %17 = arith.extf %16 : vector<128x128xbf16> to vector<128x128xf32>
      %18 = arith.addf %15, %17 : vector<128x128xf32>
      %cst_16 = arith.constant 0.000000e+00 : f32
      %19 = vector.broadcast %cst_16 : f32 to vector<128x128xf32>
      %20 = arith.cmpf ogt, %18, %19 : vector<128x128xf32>
      %cst_17 = arith.constant 0.00999999977 : f32
      %21 = vector.broadcast %cst_17 : f32 to vector<128x128xf32>
      %22 = arith.mulf %21, %18 : vector<128x128xf32>
      %23 = arith.select %20, %18, %22 : vector<128x128xi1>, vector<128x128xf32>
      %24 = arith.truncf %23 : vector<128x128xf32> to vector<128x128xbf16>
      %c0_18 = arith.constant 0 : index
      %c0_19 = arith.constant 0 : index
      %25 = vector.load %arg7[%c0_18, %c0_19] : memref<128x128xbf16, #tpu.memory_space<vmem>>, vector<128x128xbf16>
      tpu.vector_store %arg7[%c0_18, %c0_19], %24 {strides = array<i32>} : memref<128x128xbf16, #tpu.memory_space<vmem>>, vector<128x128xbf16>,
    } else {
    }
    return
  }
  func.func @transform_0(%arg0: i32, %arg1: i32, %arg2: i32) -> (i32, i32) {
    %c0_i32 = arith.constant 0 : i32
    return %arg0, %arg2 : i32, i32
  }
  func.func @transform_1(%arg0: i32, %arg1: i32, %arg2: i32) -> (i32, i32) {
    %c0_i32 = arith.constant 0 : i32
    return %arg2, %arg1 : i32, i32
  }
  func.func @transform_2(%arg0: i32, %arg1: i32, %arg2: i32) -> (i32, i32) {
    %c0_i32 = arith.constant 0 : i32
    %c0_i32_0 = arith.constant 0 : i32
    return %c0_i32, %arg1 : i32, i32
  }
  func.func @transform_3(%arg0: i32, %arg1: i32, %arg2: i32) -> (i32, i32) {
    %c0_i32 = arith.constant 0 : i32
    return %arg0, %arg1 : i32, i32
  }
  func.func @transform_4(%arg0: i32, %arg1: i32, %arg2: i32) -> (i32, i32) {
    %c0_i32 = arith.constant 0 : i32
    return %arg0, %arg1 : i32, i32
  }
}

</mosaic_0001>

<bundles_post_ra>
// kernel: two_blocks.4
= control target key start
LH: loop header
LB: loop body
LE: loop exit
PB: predicated region body
PF: predicated region fallthrough
CT: control target
= control target key end

     0   :  { %s647_s1 = inlined_call_operand.vmem [shape: bf16[128,128], index: 1, kind: input, shape index: {}]   ;;  %s648_s2 = inlined_call_operand.vmem [shape: f32[1,128], index: 2, kind: input, shape index: {}]   ;;  %s649_s0 = inlined_call_operand.vmem [shape: bf16[128,128], index: 0, kind: input, shape index: {}]   ;;  %s650_s3 = inlined_call_operand.vmem [shape: bf16[128,128], index: 3, kind: output, shape index: {}]  }
   0x1   :  { %v461_v0 = vld [vmem:[%s647_s1 + $0x38] sm:$0xff]  ;;  %v460_v1 = vld [vmem:[%s647_s1 + $0x30] sm:$0xff]  ;;  %v459_v2 = vld [vmem:[%s647_s1 + $0x28] sm:$0xff] }
   0x2   :  { %178 = vmatpush.bf16.msra.mxu0 %v461_v0  ;;  %509 = vmatpush.bf16.msra.mxu1 %v461_v0  ;;  %v458_v3 = vld [vmem:[%s647_s1 + $0x20] sm:$0xff]  ;;  %v457_v4 = vld [vmem:[%s647_s1 + $0x18] sm:$0xff]  ;;  %v456_v5 = vld [vmem:[%s647_s1 + $0x10] sm:$0xff] }
   0x3   :  { %510 = vmatpush.bf16.msra.mxu2 %v461_v0  ;;  %511 = vmatpush.bf16.msra.mxu3 %v461_v0  ;;  %v455_v6 = vld [vmem:[%s647_s1 + $0x8] sm:$0xff]  ;;  %v454_v7 = vld [vmem:[%s647_s1] sm:$0xff]  ;;  %v448_v9 = vld [vmem:[%s649_s0 + $0x10] sm:$0xff] }
   0x4   :  { %v446_v8 = vld [vmem:[%s649_s0] sm:$0xff]  ;;  %v452_v11 = vld [vmem:[%s649_s0 + $0x30] sm:$0xff]  ;;  %v447_v12 = vld [vmem:[%s649_s0 + $0x8] sm:$0xff] }
   0x5   :  { %v450_v10 = vld [vmem:[%s649_s0 + $0x20] sm:$0xff]  ;;  %v449_v13 = vld [vmem:[%s649_s0 + $0x18] sm:$0xff]  ;;  %v451_v14 = vld [vmem:[%s649_s0 + $0x28] sm:$0xff] }
   0x6   :  { %179 = vmatpush.bf16.msra.mxu0 %v460_v1  ;;  %512 = vmatpush.bf16.msra.mxu1 %v460_v1  ;;  %v453_v15 = vld [vmem:[%s649_s0 + $0x38] sm:$0xff]  ;;  %v605_v18 = vld [vmem:[%s648_s2] ss:$0 sm:$0xff] }
   0x7   :  { %513 = vmatpush.bf16.msra.mxu2 %v460_v1  ;;  %514 = vmatpush.bf16.msra.mxu3 %v460_v1 }
   0xa   :  { %180 = vmatpush.bf16.msra.mxu0 %v459_v2  ;;  %515 = vmatpush.bf16.msra.mxu1 %v459_v2 }
   0xb   :  { %516 = vmatpush.bf16.msra.mxu2 %v459_v2  ;;  %517 = vmatpush.bf16.msra.mxu3 %v459_v2 }
   0xe   :  { %181 = vmatpush.bf16.msra.mxu0 %v458_v3  ;;  %518 = vmatpush.bf16.msra.mxu1 %v458_v3 }
   0xf   :  { %519 = vmatpush.bf16.msra.mxu2 %v458_v3  ;;  %520 = vmatpush.bf16.msra.mxu3 %v458_v3 }
  0x12   :  { %182 = vmatpush.bf16.msra.mxu0 %v457_v4  ;;  %521 = vmatpush.bf16.msra.mxu1 %v457_v4 }
  0x13   :  { %522 = vmatpush.bf16.msra.mxu2 %v457_v4  ;;  %523 = vmatpush.bf16.msra.mxu3 %v457_v4 }
  0x16   :  { %183 = vmatpush.bf16.msra.mxu0 %v456_v5  ;;  %524 = vmatpush.bf16.msra.mxu1 %v456_v5 }
  0x17   :  { %525 = vmatpush.bf16.msra.mxu2 %v456_v5  ;;  %526 = vmatpush.bf16.msra.mxu3 %v456_v5 }
  0x1a   :  { %184 = vmatpush.bf16.msra.mxu0 %v455_v6  ;;  %527 = vmatpush.bf16.msra.mxu1 %v455_v6 }
  0x1b   :  { %528 = vmatpush.bf16.msra.mxu2 %v455_v6  ;;  %529 = vmatpush.bf16.msra.mxu3 %v455_v6 }
  0x1e   :  { %185 = vmatpush.bf16.msra.mxu0 %v454_v7  ;;  %530 = vmatpush.bf16.msra.mxu1 %v454_v7 }
  0x1f   :  { %531 = vmatpush.bf16.msra.mxu2 %v454_v7  ;;  %532 = vmatpush.bf16.msra.mxu3 %v454_v7 }
  0x21   :  { %186 = vmatmul.bf16.vlgmr.msra.gmra.mxu0 %v446_v8  ;;  %196 = vmatmul.bf16.vlgmr.msra.gmra.mxu1 %v448_v9 }
  0x22   :  { %206 = vmatmul.bf16.vlgmr.msra.gmra.mxu2 %v450_v10  ;;  %216 = vmatmul.bf16.vlgmr.msra.gmra.mxu3 %v452_v11 }
  0x31   :  { %191 = vmatmul.bf16.gmra.mxu0 %v447_v12  ;;  %201 = vmatmul.bf16.gmra.mxu1 %v449_v13 }
  0x32   :  { %211 = vmatmul.bf16.gmra.mxu2 %v451_v14  ;;  %221 = vmatmul.bf16.gmra.mxu3 %v453_v15 }
  0x9e   :  { %v187_v16 = vpop.f32.mrf.mxu0  ;;  %v197_v17 = vpop.f32.mrf.mxu1 }
  0x9f   :  { %v282_v19 = vadd.f32 %v605_v18, %v187_v16  ;;  %v286_v20 = vadd.f32 %v605_v18, %v197_v17 }
  0xa1   :  { %v314_v25 = vmul.f32 0.01, %v282_v19  ;;  %v318_v26 = vmul.f32 0.01, %v286_v20  ;;  %vm298_vm0 = vcmp.gt.f32.partialorder %v282_v19, 0.0  ;;  %vm302_vm1 = vcmp.gt.f32.partialorder %v286_v20, 0.0 }
  0xa3   :  { %v330_v33 = vsel %vm298_vm0, %v282_v19, %v314_v25  ;;  %v334_v34 = vsel %vm302_vm1, %v286_v20, %v318_v26 }
  0xa5   :  { %v207_v21 = vpop.f32.mrf.mxu2  ;;  %v217_v22 = vpop.f32.mrf.mxu3 }
  0xa6   :  { %v189_v23 = vpop.f32.mrf.mxu0  ;;  %v199_v24 = vpop.f32.mrf.mxu1  ;;  %v290_v31 = vadd.f32 %v605_v18, %v207_v21  ;;  %v294_v32 = vadd.f32 %v605_v18, %v217_v22 }
  0xa7   :  { %v283_v27 = vadd.f32 %v605_v18, %v189_v23  ;;  %v287_v28 = vadd.f32 %v605_v18, %v199_v24 }
  0xa8   :  { %v322_v41 = vmul.f32 0.01, %v290_v31  ;;  %v326_v42 = vmul.f32 0.01, %v294_v32  ;;  %vm306_vm4 = vcmp.gt.f32.partialorder %v290_v31, 0.0  ;;  %vm310_vm5 = vcmp.gt.f32.partialorder %v294_v32, 0.0 }
  0xa9   :  { %vm299_vm2 = vcmp.gt.f32.partialorder %v283_v27, 0.0  ;;  %v315_v29 = vmul.f32 0.01, %v283_v27  ;;  %vm303_vm3 = vcmp.gt.f32.partialorder %v287_v28, 0.0  ;;  %v319_v30 = vmul.f32 0.01, %v287_v28 }
  0xaa   :  { %v338_v49 = vsel %vm306_vm4, %v290_v31, %v322_v41  ;;  %v342_v50 = vsel %vm310_vm5, %v294_v32, %v326_v42 }
  0xab   :  { %v331_v35 = vsel %vm299_vm2, %v283_v27, %v315_v29  ;;  %v335_v36 = vsel %vm303_vm3, %v287_v28, %v319_v30 }
  0xac   :  { %v465_v37 = vpack.c.bf16 %v331_v35, %v330_v33  ;;  %v475_v38 = vpack.c.bf16 %v335_v36, %v334_v34 }
  0xad   :  { %v209_v39 = vpop.f32.mrf.mxu2  ;;  %v219_v40 = vpop.f32.mrf.mxu3 }
  0xae   :  { %466 = vst [vmem:[%s650_s3] sm:$0xff] %v465_v37   ;;  %v291_v43 = vadd.f32 %v605_v18, %v209_v39  ;;  %v295_v44 = vadd.f32 %v605_v18, %v219_v40  ;;  %v192_v45 = vpop.f32.mrf.mxu0  ;;  %v202_v46 = vpop.f32.mrf.mxu1 }
  0xaf   :  { %503 = vst [vmem:[%s650_s3 + $0x10] sm:$0xff] %v475_v38   ;;  %v284_v55 = vadd.f32 %v605_v18, %v192_v45  ;;  %v288_v56 = vadd.f32 %v605_v18, %v202_v46 }
  0xb0   :  { %vm307_vm6 = vcmp.gt.f32.partialorder %v291_v43, 0.0  ;;  %v323_v47 = vmul.f32 0.01, %v291_v43  ;;  %vm311_vm7 = vcmp.gt.f32.partialorder %v295_v44, 0.0  ;;  %v327_v48 = vmul.f32 0.01, %v295_v44 }
  0xb1   :  { %v316_v61 = vmul.f32 0.01, %v284_v55  ;;  %v320_v62 = vmul.f32 0.01, %v288_v56  ;;  %vm300_vm8 = vcmp.gt.f32.partialorder %v284_v55, 0.0  ;;  %vm304_vm9 = vcmp.gt.f32.partialorder %v288_v56, 0.0 }
  0xb2   :  { %v339_v51 = vsel %vm307_vm6, %v291_v43, %v323_v47  ;;  %v343_v52 = vsel %vm311_vm7, %v295_v44, %v327_v48 }
  0xb3   :  { %v485_v53 = vpack.c.bf16 %v339_v51, %v338_v49  ;;  %v495_v54 = vpack.c.bf16 %v343_v52, %v342_v50  ;;  %v332_v5 = vsel %vm300_vm8, %v284_v55, %v316_v61  ;;  %v336_v6 = vsel %vm304_vm9, %v288_v56, %v320_v62 }
  0xb5   :  { %505 = vst [vmem:[%s650_s3 + $0x20] sm:$0xff] %v485_v53   ;;  %v212_v57 = vpop.f32.mrf.mxu2  ;;  %v222_v58 = vpop.f32.mrf.mxu3 }
  0xb6   :  { %507 = vst [vmem:[%s650_s3 + $0x30] sm:$0xff] %v495_v54   ;;  %v194_v59 = vpop.f32.mrf.mxu0  ;;  %v204_v60 = vpop.f32.mrf.mxu1  ;;  %v292_v3 = vadd.f32 %v605_v18, %v212_v57  ;;  %v296_v4 = vadd.f32 %v605_v18, %v222_v58 }
  0xb7   :  { %v285_v63 = vadd.f32 %v605_v18, %v194_v59  ;;  %v289_v0 = vadd.f32 %v605_v18, %v204_v60 }
  0xb8   :  { %v324_v13 = vmul.f32 0.01, %v292_v3  ;;  %v328_v14 = vmul.f32 0.01, %v296_v4  ;;  %vm308_vm12 = vcmp.gt.f32.partialorder %v292_v3, 0.0  ;;  %vm312_vm13 = vcmp.gt.f32.partialorder %v296_v4, 0.0 }
  0xb9   :  { %vm301_vm10 = vcmp.gt.f32.partialorder %v285_v63, 0.0  ;;  %v317_v1 = vmul.f32 0.01, %v285_v63  ;;  %vm305_vm11 = vcmp.gt.f32.partialorder %v289_v0, 0.0  ;;  %v321_v2 = vmul.f32 0.01, %v289_v0 }
  0xba   :  { %v340_v20 = vsel %vm308_vm12, %v292_v3, %v324_v13  ;;  %v344_v21 = vsel %vm312_vm13, %v296_v4, %v328_v14 }
  0xbb   :  { %v333_v7 = vsel %vm301_vm10, %v285_v63, %v317_v1  ;;  %v337_v8 = vsel %vm305_vm11, %v289_v0, %v321_v2 }
  0xbc   :  { %v470_v9 = vpack.c.bf16 %v333_v7, %v332_v5  ;;  %v480_v10 = vpack.c.bf16 %v337_v8, %v336_v6 }
  0xbd   :  { %v214_v11 = vpop.f32.mrf.mxu2  ;;  %v224_v12 = vpop.f32.mrf.mxu3 }
  0xbe   :  { %502 = vst [vmem:[%s650_s3 + $0x8] sm:$0xff] %v470_v9   ;;  %v293_v15 = vadd.f32 %v605_v18, %v214_v11  ;;  %v297_v16 = vadd.f32 %v605_v18, %v224_v12 }
  0xbf   :  { %504 = vst [vmem:[%s650_s3 + $0x18] sm:$0xff] %v480_v10  }
  0xc0   :  { %vm309_vm14 = vcmp.gt.f32.partialorder %v293_v15, 0.0  ;;  %v325_v17 = vmul.f32 0.01, %v293_v15  ;;  %vm313_vm15 = vcmp.gt.f32.partialorder %v297_v16, 0.0  ;;  %v329_v19 = vmul.f32 0.01, %v297_v16 }
  0xc2   :  { %v341_v22 = vsel %vm309_vm14, %v293_v15, %v325_v17  ;;  %v345_v23 = vsel %vm313_vm15, %v297_v16, %v329_v19 }
  0xc3   :  { %v490_v24 = vpack.c.bf16 %v341_v22, %v340_v20  ;;  %v500_v25 = vpack.c.bf16 %v345_v23, %v344_v21 }
  0xc5   :  { %506 = vst [vmem:[%s650_s3 + $0x28] sm:$0xff] %v490_v24  }
  0xc6   :  { %508 = vst [vmem:[%s650_s3 + $0x38] sm:$0xff] %v500_v25  }

// kernel: two_blocks.5
= control target key start
LH: loop header
LB: loop body
LE: loop exit
PB: predicated region body
PF: predicated region fallthrough
CT: control target
= control target key end

     0   :  { %s960_s3 = inlined_call_operand.vmem [shape: bf16[128,128], index: 3, kind: input, shape index: {}]   ;;  %s961_s1 = inlined_call_operand.vmem [shape: bf16[128,128], index: 1, kind: input, shape index: {}]   ;;  %s962_s2 = inlined_call_operand.vmem [shape: bf16[128,128], index: 2, kind: input, shape index: {}]   ;;  %s963_s0 = inlined_call_operand.vmem [shape: bf16[128,128], index: 0, kind: input, shape index: {}]   ;;  %s964_s4 = inlined_call_operand.vmem [shape: f32[1,128], index: 4, kind: input, shape index: {}]   ;;  %s965_s5 = inlined_call_operand.vmem [shape: bf16[128,128], index: 5, kind: output, shape index: {}]  }
   0x1   :  { %v708_v0 = vld [vmem:[%s960_s3 + $0x38] sm:$0xff]  ;;  %v707_v2 = vld [vmem:[%s960_s3 + $0x30] sm:$0xff]  ;;  %v706_v4 = vld [vmem:[%s960_s3 + $0x28] sm:$0xff] }
   0x2   :  { %v724_v1 = vld [vmem:[%s961_s1 + $0x38] sm:$0xff]  ;;  %152 = vmatpush.bf16.msra.mxu0 %v708_v0  ;;  %772 = vmatpush.bf16.msra.mxu2 %v708_v0  ;;  %v723_v3 = vld [vmem:[%s961_s1 + $0x30] sm:$0xff]  ;;  %v722_v5 = vld [vmem:[%s961_s1 + $0x28] sm:$0xff] }
   0x3   :  { %361 = vmatpush.bf16.msra.mxu1 %v724_v1  ;;  %780 = vmatpush.bf16.msra.mxu3 %v724_v1  ;;  %v705_v6 = vld [vmem:[%s960_s3 + $0x20] sm:$0xff]  ;;  %v704_v8 = vld [vmem:[%s960_s3 + $0x18] sm:$0xff]  ;;  %v703_v10 = vld [vmem:[%s960_s3 + $0x10] sm:$0xff] }
   0x4   :  { %v721_v7 = vld [vmem:[%s961_s1 + $0x20] sm:$0xff]  ;;  %v720_v9 = vld [vmem:[%s961_s1 + $0x18] sm:$0xff]  ;;  %v719_v11 = vld [vmem:[%s961_s1 + $0x10] sm:$0xff] }
   0x5   :  { %v702_v12 = vld [vmem:[%s960_s3 + $0x8] sm:$0xff]  ;;  %v701_v14 = vld [vmem:[%s960_s3] sm:$0xff]  ;;  %v695_v24 = vld [vmem:[%s962_s2 + $0x10] sm:$0xff] }
   0x6   :  { %153 = vmatpush.bf16.msra.mxu0 %v707_v2  ;;  %773 = vmatpush.bf16.msra.mxu2 %v707_v2  ;;  %v718_v13 = vld [vmem:[%s961_s1 + $0x8] sm:$0xff]  ;;  %v717_v15 = vld [vmem:[%s961_s1] sm:$0xff]  ;;  %v699_v25 = vld [vmem:[%s962_s2 + $0x30] sm:$0xff] }
   0x7   :  { %362 = vmatpush.bf16.msra.mxu1 %v723_v3  ;;  %781 = vmatpush.bf16.msra.mxu3 %v723_v3  ;;  %v693_v16 = vld [vmem:[%s962_s2] sm:$0xff]  ;;  %v694_v20 = vld [vmem:[%s962_s2 + $0x8] sm:$0xff]  ;;  %v711_v26 = vld [vmem:[%s963_s0 + $0x10] sm:$0xff] }
   0x8   :  { %v697_v17 = vld [vmem:[%s962_s2 + $0x20] sm:$0xff]  ;;  %v698_v21 = vld [vmem:[%s962_s2 + $0x28] sm:$0xff]  ;;  %v715_v27 = vld [vmem:[%s963_s0 + $0x30] sm:$0xff] }
   0x9   :  { %v709_v18 = vld [vmem:[%s963_s0] sm:$0xff]  ;;  %v710_v22 = vld [vmem:[%s963_s0 + $0x8] sm:$0xff]  ;;  %v696_v28 = vld [vmem:[%s962_s2 + $0x18] sm:$0xff] }
   0xa   :  { %154 = vmatpush.bf16.msra.mxu0 %v706_v4  ;;  %774 = vmatpush.bf16.msra.mxu2 %v706_v4  ;;  %v713_v19 = vld [vmem:[%s963_s0 + $0x20] sm:$0xff]  ;;  %v714_v23 = vld [vmem:[%s963_s0 + $0x28] sm:$0xff]  ;;  %v700_v29 = vld [vmem:[%s962_s2 + $0x38] sm:$0xff] }
   0xb   :  { %363 = vmatpush.bf16.msra.mxu1 %v722_v5  ;;  %782 = vmatpush.bf16.msra.mxu3 %v722_v5  ;;  %v712_v30 = vld [vmem:[%s963_s0 + $0x18] sm:$0xff]  ;;  %v918_v35 = vld [vmem:[%s964_s4] ss:$0 sm:$0xff] }
   0xc   :  { %v716_v31 = vld [vmem:[%s963_s0 + $0x38] sm:$0xff] }
   0xe   :  { %155 = vmatpush.bf16.msra.mxu0 %v705_v6  ;;  %775 = vmatpush.bf16.msra.mxu2 %v705_v6 }
   0xf   :  { %364 = vmatpush.bf16.msra.mxu1 %v721_v7  ;;  %783 = vmatpush.bf16.msra.mxu3 %v721_v7 }
  0x12   :  { %156 = vmatpush.bf16.msra.mxu0 %v704_v8  ;;  %776 = vmatpush.bf16.msra.mxu2 %v704_v8 }
  0x13   :  { %365 = vmatpush.bf16.msra.mxu1 %v720_v9  ;;  %784 = vmatpush.bf16.msra.mxu3 %v720_v9 }
  0x16   :  { %157 = vmatpush.bf16.msra.mxu0 %v703_v10  ;;  %777 = vmatpush.bf16.msra.mxu2 %v703_v10 }
  0x17   :  { %366 = vmatpush.bf16.msra.mxu1 %v719_v11  ;;  %785 = vmatpush.bf16.msra.mxu3 %v719_v11 }
  0x1a   :  { %158 = vmatpush.bf16.msra.mxu0 %v702_v12  ;;  %778 = vmatpush.bf16.msra.mxu2 %v702_v12 }
  0x1b   :  { %367 = vmatpush.bf16.msra.mxu1 %v718_v13  ;;  %786 = vmatpush.bf16.msra.mxu3 %v718_v13 }
  0x1e   :  { %159 = vmatpush.bf16.msra.mxu0 %v701_v14  ;;  %779 = vmatpush.bf16.msra.mxu2 %v701_v14 }
  0x1f   :  { %368 = vmatpush.bf16.msra.mxu1 %v717_v15  ;;  %787 = vmatpush.bf16.msra.mxu3 %v717_v15 }
  0x21   :  { %160 = vmatmul.bf16.vlgmr.msra.gmra.mxu0 %v693_v16  ;;  %180 = vmatmul.bf16.vlgmr.msra.gmra.mxu2 %v697_v17 }
  0x22   :  { %369 = vmatmul.bf16.vlgmr.msra.gmra.mxu1 %v709_v18  ;;  %389 = vmatmul.bf16.vlgmr.msra.gmra.mxu3 %v713_v19 }
  0x31   :  { %165 = vmatmul.bf16.gmra.mxu0 %v694_v20  ;;  %185 = vmatmul.bf16.gmra.mxu2 %v698_v21 }
  0x32   :  { %374 = vmatmul.bf16.gmra.mxu1 %v710_v22  ;;  %394 = vmatmul.bf16.gmra.mxu3 %v714_v23 }
  0x41   :  { %170 = vmatmul.bf16.gmra.mxu0 %v695_v24  ;;  %190 = vmatmul.bf16.gmra.mxu2 %v699_v25 }
  0x42   :  { %379 = vmatmul.bf16.gmra.mxu1 %v711_v26  ;;  %399 = vmatmul.bf16.gmra.mxu3 %v715_v27 }
  0x51   :  { %175 = vmatmul.bf16.gmra.mxu0 %v696_v28  ;;  %195 = vmatmul.bf16.gmra.mxu2 %v700_v29 }
  0x52   :  { %384 = vmatmul.bf16.gmra.mxu1 %v712_v30  ;;  %404 = vmatmul.bf16.gmra.mxu3 %v716_v31 }
  0x9e   :  { %v161_v32 = vpop.f32.mrf.mxu0 }
  0x9f   :  { %v370_v33 = vpop.f32.mrf.mxu1 }
  0xa0   :  { %v410_v34 = vadd.f32 %v370_v33, %v161_v32 }
  0xa2   :  { %v465_v38 = vadd.f32 %v918_v35, %v410_v34 }
  0xa4   :  { %v181_v36 = vpop.f32.mrf.mxu2  ;;  %v497_v43 = vmul.f32 0.01, %v465_v38  ;;  %vm481_vm0 = vcmp.gt.f32.partialorder %v465_v38, 0.0 }
  0xa5   :  { %v390_v37 = vpop.f32.mrf.mxu3 }
  0xa6   :  { %v163_v39 = vpop.f32.mrf.mxu0  ;;  %v418_v41 = vadd.f32 %v390_v37, %v181_v36  ;;  %v513_v49 = vsel %vm481_vm0, %v465_v38, %v497_v43 }
  0xa7   :  { %v372_v40 = vpop.f32.mrf.mxu1 }
  0xa8   :  { %v411_v42 = vadd.f32 %v372_v40, %v163_v39  ;;  %v473_v45 = vadd.f32 %v918_v35, %v418_v41 }
  0xaa   :  { %v466_v44 = vadd.f32 %v918_v35, %v411_v42  ;;  %v505_v55 = vmul.f32 0.01, %v473_v45  ;;  %vm489_vm2 = vcmp.gt.f32.partialorder %v473_v45, 0.0 }
  0xac   :  { %vm482_vm1 = vcmp.gt.f32.partialorder %v466_v44, 0.0  ;;  %v498_v46 = vmul.f32 0.01, %v466_v44  ;;  %v183_v47 = vpop.f32.mrf.mxu2  ;;  %v521_v59 = vsel %vm489_vm2, %v473_v45, %v505_v55 }
  0xad   :  { %v392_v48 = vpop.f32.mrf.mxu3 }
  0xae   :  { %v514_v50 = vsel %vm482_vm1, %v466_v44, %v498_v46  ;;  %v419_v51 = vadd.f32 %v392_v48, %v183_v47  ;;  %v166_v52 = vpop.f32.mrf.mxu0 }
  0xaf   :  { %v728_v53 = vpack.c.bf16 %v514_v50, %v513_v49  ;;  %v375_v54 = vpop.f32.mrf.mxu1 }
  0xb0   :  { %v474_v56 = vadd.f32 %v918_v35, %v419_v51  ;;  %v412_v58 = vadd.f32 %v375_v54, %v166_v52 }
  0xb1   :  { %729 = vst [vmem:[%s965_s5] sm:$0xff] %v728_v53  }
  0xb2   :  { %vm490_vm3 = vcmp.gt.f32.partialorder %v474_v56, 0.0  ;;  %v506_v57 = vmul.f32 0.01, %v474_v56  ;;  %v467_v0 = vadd.f32 %v918_v35, %v412_v58 }
  0xb4   :  { %v522_v60 = vsel %vm490_vm3, %v474_v56, %v506_v57  ;;  %v186_v61 = vpop.f32.mrf.mxu2  ;;  %v499_v5 = vmul.f32 0.01, %v467_v0  ;;  %vm483_vm4 = vcmp.gt.f32.partialorder %v467_v0, 0.0 }
  0xb5   :  { %v748_v62 = vpack.c.bf16 %v522_v60, %v521_v59  ;;  %v395_v63 = vpop.f32.mrf.mxu3 }
  0xb6   :  { %v168_v1 = vpop.f32.mrf.mxu0  ;;  %v420_v3 = vadd.f32 %v395_v63, %v186_v61  ;;  %v515_v11 = vsel %vm483_vm4, %v467_v0, %v499_v5 }
  0xb7   :  { %768 = vst [vmem:[%s965_s5 + $0x20] sm:$0xff] %v748_v62   ;;  %v377_v2 = vpop.f32.mrf.mxu1 }
  0xb8   :  { %v413_v4 = vadd.f32 %v377_v2, %v168_v1  ;;  %v475_v7 = vadd.f32 %v918_v35, %v420_v3 }
  0xba   :  { %v468_v6 = vadd.f32 %v918_v35, %v413_v4  ;;  %v507_v17 = vmul.f32 0.01, %v475_v7  ;;  %vm491_vm6 = vcmp.gt.f32.partialorder %v475_v7, 0.0 }
  0xbc   :  { %vm484_vm5 = vcmp.gt.f32.partialorder %v468_v6, 0.0  ;;  %v500_v8 = vmul.f32 0.01, %v468_v6  ;;  %v188_v9 = vpop.f32.mrf.mxu2  ;;  %v523_v21 = vsel %vm491_vm6, %v475_v7, %v507_v17 }
  0xbd   :  { %v397_v10 = vpop.f32.mrf.mxu3 }
  0xbe   :  { %v516_v12 = vsel %vm484_vm5, %v468_v6, %v500_v8  ;;  %v421_v13 = vadd.f32 %v397_v10, %v188_v9  ;;  %v171_v14 = vpop.f32.mrf.mxu0 }
  0xbf   :  { %v733_v15 = vpack.c.bf16 %v516_v12, %v515_v11  ;;  %v380_v16 = vpop.f32.mrf.mxu1 }
  0xc0   :  { %v476_v18 = vadd.f32 %v918_v35, %v421_v13  ;;  %v414_v20 = vadd.f32 %v380_v16, %v171_v14 }
  0xc1   :  { %765 = vst [vmem:[%s965_s5 + $0x8] sm:$0xff] %v733_v15  }
  0xc2   :  { %vm492_vm7 = vcmp.gt.f32.partialorder %v476_v18, 0.0  ;;  %v508_v19 = vmul.f32 0.01, %v476_v18  ;;  %v469_v26 = vadd.f32 %v918_v35, %v414_v20 }
  0xc4   :  { %v524_v22 = vsel %vm492_vm7, %v476_v18, %v508_v19  ;;  %v191_v23 = vpop.f32.mrf.mxu2  ;;  %v501_v31 = vmul.f32 0.01, %v469_v26  ;;  %vm485_vm8 = vcmp.gt.f32.partialorder %v469_v26, 0.0 }
  0xc5   :  { %v753_v24 = vpack.c.bf16 %v524_v22, %v523_v21  ;;  %v400_v25 = vpop.f32.mrf.mxu3 }
  0xc6   :  { %v173_v27 = vpop.f32.mrf.mxu0  ;;  %v422_v29 = vadd.f32 %v400_v25, %v191_v23  ;;  %v517_v38 = vsel %vm485_vm8, %v469_v26, %v501_v31 }
  0xc7   :  { %769 = vst [vmem:[%s965_s5 + $0x28] sm:$0xff] %v753_v24   ;;  %v382_v28 = vpop.f32.mrf.mxu1 }
  0xc8   :  { %v415_v30 = vadd.f32 %v382_v28, %v173_v27  ;;  %v477_v33 = vadd.f32 %v918_v35, %v422_v29 }
  0xca   :  { %v470_v32 = vadd.f32 %v918_v35, %v415_v30  ;;  %v509_v44 = vmul.f32 0.01, %v477_v33  ;;  %vm493_vm10 = vcmp.gt.f32.partialorder %v477_v33, 0.0 }
  0xcc   :  { %vm486_vm9 = vcmp.gt.f32.partialorder %v470_v32, 0.0  ;;  %v502_v34 = vmul.f32 0.01, %v470_v32  ;;  %v193_v36 = vpop.f32.mrf.mxu2  ;;  %v525_v48 = vsel %vm493_vm10, %v477_v33, %v509_v44 }
  0xcd   :  { %v402_v37 = vpop.f32.mrf.mxu3 }
  0xce   :  { %v518_v39 = vsel %vm486_vm9, %v470_v32, %v502_v34  ;;  %v423_v40 = vadd.f32 %v402_v37, %v193_v36  ;;  %v176_v41 = vpop.f32.mrf.mxu0 }
  0xcf   :  { %v738_v42 = vpack.c.bf16 %v518_v39, %v517_v38  ;;  %v385_v43 = vpop.f32.mrf.mxu1 }
  0xd0   :  { %v478_v45 = vadd.f32 %v918_v35, %v423_v40  ;;  %v416_v47 = vadd.f32 %v385_v43, %v176_v41 }
  0xd1   :  { %766 = vst [vmem:[%s965_s5 + $0x10] sm:$0xff] %v738_v42  }
  0xd2   :  { %vm494_vm11 = vcmp.gt.f32.partialorder %v478_v45, 0.0  ;;  %v510_v46 = vmul.f32 0.01, %v478_v45  ;;  %v471_v53 = vadd.f32 %v918_v35, %v416_v47 }
  0xd4   :  { %v526_v49 = vsel %vm494_vm11, %v478_v45, %v510_v46  ;;  %v196_v50 = vpop.f32.mrf.mxu2  ;;  %v503_v58 = vmul.f32 0.01, %v471_v53  ;;  %vm487_vm12 = vcmp.gt.f32.partialorder %v471_v53, 0.0 }
  0xd5   :  { %v758_v51 = vpack.c.bf16 %v526_v49, %v525_v48  ;;  %v405_v52 = vpop.f32.mrf.mxu3 }
  0xd6   :  { %v178_v54 = vpop.f32.mrf.mxu0  ;;  %v424_v56 = vadd.f32 %v405_v52, %v196_v50  ;;  %v519_v0 = vsel %vm487_vm12, %v471_v53, %v503_v58 }
  0xd7   :  { %770 = vst [vmem:[%s965_s5 + $0x30] sm:$0xff] %v758_v51   ;;  %v387_v55 = vpop.f32.mrf.mxu1 }
  0xd8   :  { %v417_v57 = vadd.f32 %v387_v55, %v178_v54  ;;  %v479_v60 = vadd.f32 %v918_v35, %v424_v56 }
  0xda   :  { %v472_v59 = vadd.f32 %v918_v35, %v417_v57  ;;  %v511_v4 = vmul.f32 0.01, %v479_v60  ;;  %vm495_vm14 = vcmp.gt.f32.partialorder %v479_v60, 0.0 }
  0xdc   :  { %vm488_vm13 = vcmp.gt.f32.partialorder %v472_v59, 0.0  ;;  %v504_v61 = vmul.f32 0.01, %v472_v59  ;;  %v198_v62 = vpop.f32.mrf.mxu2  ;;  %v527_v7 = vsel %vm495_vm14, %v479_v60, %v511_v4 }
  0xdd   :  { %v407_v63 = vpop.f32.mrf.mxu3 }
  0xde   :  { %v520_v1 = vsel %vm488_vm13, %v472_v59, %v504_v61  ;;  %v425_v2 = vadd.f32 %v407_v63, %v198_v62 }
  0xdf   :  { %v743_v3 = vpack.c.bf16 %v520_v1, %v519_v0 }
  0xe0   :  { %v480_v5 = vadd.f32 %v918_v35, %v425_v2 }
  0xe1   :  { %767 = vst [vmem:[%s965_s5 + $0x18] sm:$0xff] %v743_v3  }
  0xe2   :  { %vm496_vm15 = vcmp.gt.f32.partialorder %v480_v5, 0.0  ;;  %v512_v6 = vmul.f32 0.01, %v480_v5 }
  0xe4   :  { %v528_v8 = vsel %vm496_vm15, %v480_v5, %v512_v6 }
  0xe5   :  { %v763_v9 = vpack.c.bf16 %v528_v8, %v527_v7 }
  0xe7   :  { %771 = vst [vmem:[%s965_s5 + $0x38] sm:$0xff] %v763_v9  }

// kernel: two_blocks.7
= control target key start
LH: loop header
LB: loop body
LE: loop exit
PB: predicated region body
PF: predicated region fallthrough
CT: control target
= control target key end

     0   :  { %s792_s0 = inlined_call_operand.vmem [shape: bf16[128,128], index: 0, kind: input, shape index: {}]   ;;  %s793_s1 = inlined_call_operand.vmem [shape: bf16[128,128], index: 1, kind: input, shape index: {}]   ;;  %s794_s2 = inlined_call_operand.vmem [shape: f32[1,128], index: 2, kind: input, shape index: {}]   ;;  %s795_s3 = inlined_call_operand.vmem [shape: bf16[128,128], index: 3, kind: input, shape index: {}]   ;;  %s796_s4 = inlined_call_operand.hbm [shape: bf16[128,128], index: 4, kind: output, shape index: {}]  }
   0x1   :  { %v527_v0 = vld [vmem:[%s793_s1 + $0x38] sm:$0xff]  ;;  %v526_v1 = vld [vmem:[%s793_s1 + $0x30] sm:$0xff] }
   0x2   :  { %182 = vmatpush.bf16.msra.mxu0 %v527_v0  ;;  %614 = vmatpush.bf16.msra.mxu1 %v527_v0 }
   0x3   :  { %615 = vmatpush.bf16.msra.mxu2 %v527_v0  ;;  %616 = vmatpush.bf16.msra.mxu3 %v527_v0 }
   0x4   :  { %9 = vsyncpa [#allocation4], 0  ;;  %v525_v2 = vld [vmem:[%s793_s1 + $0x28] sm:$0xff]  ;;  %v524_v3 = vld [vmem:[%s793_s1 + $0x20] sm:$0xff]  ;;  %s669_s13 = smov 64   ;;  %s670_s14 = smov 4  }
   0x5   :  { %v523_v4 = vld [vmem:[%s793_s1 + $0x18] sm:$0xff]  ;;  %v522_v5 = vld [vmem:[%s793_s1 + $0x10] sm:$0xff]  ;;  %v521_v6 = vld [vmem:[%s793_s1 + $0x8] sm:$0xff] }
   0x6   :  { %183 = vmatpush.bf16.msra.mxu0 %v526_v1  ;;  %617 = vmatpush.bf16.msra.mxu1 %v526_v1  ;;  %v520_v7 = vld [vmem:[%s793_s1] sm:$0xff]  ;;  %v514_v9 = vld [vmem:[%s792_s0 + $0x10] sm:$0xff]  ;;  %v513_v12 = vld [vmem:[%s792_s0 + $0x8] sm:$0xff]  ;;  %s436_s1 = sshll.u32 %s796_s4, 4  ;;  %s437_s1 = int_to_ptr.hbm [resolvable:$true] %s436_s1 }
   0x7   :  { %618 = vmatpush.bf16.msra.mxu2 %v526_v1  ;;  %619 = vmatpush.bf16.msra.mxu3 %v526_v1  ;;  %v512_v8 = vld [vmem:[%s792_s0] sm:$0xff]  ;;  %v518_v11 = vld [vmem:[%s792_s0 + $0x30] sm:$0xff]  ;;  %v515_v13 = vld [vmem:[%s792_s0 + $0x18] sm:$0xff] }
   0x8   :  { %v516_v10 = vld [vmem:[%s792_s0 + $0x20] sm:$0xff]  ;;  %v517_v14 = vld [vmem:[%s792_s0 + $0x28] sm:$0xff]  ;;  %v519_v15 = vld [vmem:[%s792_s0 + $0x38] sm:$0xff] }
   0x9   :  { %v747_v16 = vld [vmem:[%s794_s2] ss:$0 sm:$0xff]  ;;  %v601_v20 = vld [vmem:[%s795_s3 + $0x10] sm:$0xff]   ;;  %v600_v51 = vld [vmem:[%s795_s3 + $0x8] sm:$0xff]  }
   0xa   :  { %184 = vmatpush.bf16.msra.mxu0 %v525_v2  ;;  %620 = vmatpush.bf16.msra.mxu1 %v525_v2  ;;  %v529_v18 = vld [vmem:[%s795_s3] sm:$0xff]   ;;  %v538_v24 = vunpack.c.l.bf16 %v601_v20  ;;  %v605_v30 = vld [vmem:[%s795_s3 + $0x30] sm:$0xff]   ;;  %v539_v32 = vunpack.c.h.bf16 %v601_v20  ;;  %v602_v52 = vld [vmem:[%s795_s3 + $0x18] sm:$0xff]   ;;  %v534_v1 = vunpack.c.l.bf16 %v600_v51 }
   0xb   :  { %621 = vmatpush.bf16.msra.mxu2 %v525_v2  ;;  %622 = vmatpush.bf16.msra.mxu3 %v525_v2  ;;  %v530_v22 = vunpack.c.l.bf16 %v529_v18  ;;  %v603_v28 = vld [vmem:[%s795_s3 + $0x20] sm:$0xff]   ;;  %v531_v31 = vunpack.c.h.bf16 %v529_v18  ;;  %v554_v40 = vunpack.c.l.bf16 %v605_v30  ;;  %v555_v50 = vunpack.c.h.bf16 %v605_v30 }
   0xc   :  { %v546_v38 = vunpack.c.l.bf16 %v603_v28  ;;  %v547_v49 = vunpack.c.h.bf16 %v603_v28  ;;  %v542_v2 = vunpack.c.l.bf16 %v602_v52 }
   0xe   :  { %185 = vmatpush.bf16.msra.mxu0 %v524_v3  ;;  %623 = vmatpush.bf16.msra.mxu1 %v524_v3 }
   0xf   :  { %624 = vmatpush.bf16.msra.mxu2 %v524_v3  ;;  %625 = vmatpush.bf16.msra.mxu3 %v524_v3 }
  0x12   :  { %186 = vmatpush.bf16.msra.mxu0 %v523_v4  ;;  %626 = vmatpush.bf16.msra.mxu1 %v523_v4 }
  0x13   :  { %627 = vmatpush.bf16.msra.mxu2 %v523_v4  ;;  %628 = vmatpush.bf16.msra.mxu3 %v523_v4 }
  0x16   :  { %187 = vmatpush.bf16.msra.mxu0 %v522_v5  ;;  %629 = vmatpush.bf16.msra.mxu1 %v522_v5 }
  0x17   :  { %630 = vmatpush.bf16.msra.mxu2 %v522_v5  ;;  %631 = vmatpush.bf16.msra.mxu3 %v522_v5 }
  0x1a   :  { %188 = vmatpush.bf16.msra.mxu0 %v521_v6  ;;  %632 = vmatpush.bf16.msra.mxu1 %v521_v6 }
  0x1b   :  { %633 = vmatpush.bf16.msra.mxu2 %v521_v6  ;;  %634 = vmatpush.bf16.msra.mxu3 %v521_v6 }
  0x1e   :  { %189 = vmatpush.bf16.msra.mxu0 %v520_v7  ;;  %635 = vmatpush.bf16.msra.mxu1 %v520_v7 }
  0x1f   :  { %636 = vmatpush.bf16.msra.mxu2 %v520_v7  ;;  %637 = vmatpush.bf16.msra.mxu3 %v520_v7 }
  0x21   :  { %190 = vmatmul.bf16.vlgmr.msra.gmra.mxu0 %v512_v8  ;;  %200 = vmatmul.bf16.vlgmr.msra.gmra.mxu1 %v514_v9 }
  0x22   :  { %210 = vmatmul.bf16.vlgmr.msra.gmra.mxu2 %v516_v10  ;;  %220 = vmatmul.bf16.vlgmr.msra.gmra.mxu3 %v518_v11  ;;  %v535_v11 = vunpack.c.h.bf16 %v600_v51 }
  0x31   :  { %195 = vmatmul.bf16.gmra.mxu0 %v513_v12  ;;  %205 = vmatmul.bf16.gmra.mxu1 %v515_v13  ;;  %v543_v12 = vunpack.c.h.bf16 %v602_v52 }
  0x32   :  { %215 = vmatmul.bf16.gmra.mxu2 %v517_v14  ;;  %225 = vmatmul.bf16.gmra.mxu3 %v519_v15 }
  0x9e   :  { %v191_v17 = vpop.f32.mrf.mxu0  ;;  %v201_v19 = vpop.f32.mrf.mxu1 }
  0x9f   :  { %v286_v21 = vadd.f32 %v747_v16, %v191_v17  ;;  %v290_v23 = vadd.f32 %v747_v16, %v201_v19 }
  0xa1   :  { %v334_v25 = vadd.f32 %v530_v22, %v286_v21  ;;  %v338_v26 = vadd.f32 %v538_v24, %v290_v23  ;;  %v604_v23 = vld [vmem:[%s795_s3 + $0x28] sm:$0xff]  }
  0xa3   :  { %v366_v41 = vmul.f32 0.01, %v334_v25  ;;  %v370_v42 = vmul.f32 0.01, %v338_v26  ;;  %vm350_vm0 = vcmp.gt.f32.partialorder %v334_v25, 0.0  ;;  %vm354_vm1 = vcmp.gt.f32.partialorder %v338_v26, 0.0 }
  0xa5   :  { %v211_v27 = vpop.f32.mrf.mxu2  ;;  %v221_v29 = vpop.f32.mrf.mxu3  ;;  %v382_v53 = vsel %vm350_vm0, %v334_v25, %v366_v41  ;;  %v386_v54 = vsel %vm354_vm1, %v338_v26, %v370_v42  ;;  %v606_v25 = vld [vmem:[%s795_s3 + $0x38] sm:$0xff]   ;;  %v551_v42 = vunpack.c.h.bf16 %v604_v23  ;;  %s668_s3 = smov [#allocation3]  }
  0xa6   :  { %v193_v33 = vpop.f32.mrf.mxu0  ;;  %v203_v34 = vpop.f32.mrf.mxu1  ;;  %v294_v37 = vadd.f32 %v747_v16, %v211_v27  ;;  %v298_v39 = vadd.f32 %v747_v16, %v221_v29  ;;  %s434_s10 = sshll.u32 %s668_s3, 4  ;;  %s435_s10 = int_to_ptr.vmem [resolvable:$true] %s434_s10 }
  0xa7   :  { %v287_v35 = vadd.f32 %v747_v16, %v193_v33  ;;  %v291_v36 = vadd.f32 %v747_v16, %v203_v34  ;;  %v558_v33 = vunpack.c.l.bf16 %v606_v25 }
  0xa8   :  { %v342_v47 = vadd.f32 %v546_v38, %v294_v37  ;;  %v346_v48 = vadd.f32 %v554_v40, %v298_v39 }
  0xa9   :  { %v335_v43 = vadd.f32 %v531_v31, %v287_v35  ;;  %v339_v44 = vadd.f32 %v539_v32, %v291_v36  ;;  %v550_v31 = vunpack.c.l.bf16 %v604_v23 }
  0xaa   :  { %v374_v3 = vmul.f32 0.01, %v342_v47  ;;  %v378_v4 = vmul.f32 0.01, %v346_v48  ;;  %vm358_vm4 = vcmp.gt.f32.partialorder %v342_v47, 0.0  ;;  %vm362_vm5 = vcmp.gt.f32.partialorder %v346_v48, 0.0 }
  0xab   :  { %vm351_vm2 = vcmp.gt.f32.partialorder %v335_v43, 0.0  ;;  %v367_v45 = vmul.f32 0.01, %v335_v43  ;;  %vm355_vm3 = vcmp.gt.f32.partialorder %v339_v44, 0.0  ;;  %v371_v46 = vmul.f32 0.01, %v339_v44 }
  0xac   :  { %v390_v13 = vsel %vm358_vm4, %v342_v47, %v374_v3  ;;  %v394_v14 = vsel %vm362_vm5, %v346_v48, %v378_v4 }
  0xad   :  { %v383_v55 = vsel %vm351_vm2, %v335_v43, %v367_v45  ;;  %v387_v56 = vsel %vm355_vm3, %v339_v44, %v371_v46  ;;  %v213_v57 = vpop.f32.mrf.mxu2  ;;  %v223_v58 = vpop.f32.mrf.mxu3  ;;  %v559_v43 = vunpack.c.h.bf16 %v606_v25 }
  0xae   :  { %v563_v59 = vpack.c.bf16 %v383_v55, %v382_v53  ;;  %v573_v60 = vpack.c.bf16 %v387_v56, %v386_v54  ;;  %v295_v61 = vadd.f32 %v747_v16, %v213_v57  ;;  %v299_v62 = vadd.f32 %v747_v16, %v223_v58  ;;  %v196_v63 = vpop.f32.mrf.mxu0  ;;  %v206_v0 = vpop.f32.mrf.mxu1 }
  0xaf   :  { %v288_v7 = vadd.f32 %v747_v16, %v196_v63  ;;  %v292_v8 = vadd.f32 %v747_v16, %v206_v0 }
  0xb0   :  { %564 = vst [vmem:[#allocation3] sm:$0xff] %v563_v59   ;;  %v343_v5 = vadd.f32 %v547_v49, %v295_v61  ;;  %v347_v6 = vadd.f32 %v555_v50, %v299_v62 }
  0xb1   :  { %608 = vst [vmem:[#allocation3 + $0x10] sm:$0xff] %v573_v60   ;;  %v336_v20 = vadd.f32 %v534_v1, %v288_v7  ;;  %v340_v21 = vadd.f32 %v542_v2, %v292_v8 }
  0xb2   :  { %vm359_vm6 = vcmp.gt.f32.partialorder %v343_v5, 0.0  ;;  %v375_v9 = vmul.f32 0.01, %v343_v5  ;;  %vm363_vm7 = vcmp.gt.f32.partialorder %v347_v6, 0.0  ;;  %v379_v10 = vmul.f32 0.01, %v347_v6 }
  0xb3   :  { %v368_v34 = vmul.f32 0.01, %v336_v20  ;;  %v372_v35 = vmul.f32 0.01, %v340_v21  ;;  %vm352_vm8 = vcmp.gt.f32.partialorder %v336_v20, 0.0  ;;  %vm356_vm9 = vcmp.gt.f32.partialorder %v340_v21, 0.0 }
  0xb4   :  { %v391_v15 = vsel %vm359_vm6, %v343_v5, %v375_v9  ;;  %v395_v17 = vsel %vm363_vm7, %v347_v6, %v379_v10 }
  0xb5   :  { %v583_v18 = vpack.c.bf16 %v391_v15, %v390_v13  ;;  %v593_v19 = vpack.c.bf16 %v395_v17, %v394_v14  ;;  %v216_v22 = vpop.f32.mrf.mxu2  ;;  %v226_v24 = vpop.f32.mrf.mxu3  ;;  %v384_v44 = vsel %vm352_vm8, %v336_v20, %v368_v34  ;;  %v388_v45 = vsel %vm356_vm9, %v340_v21, %v372_v35 }
  0xb6   :  { %v198_v26 = vpop.f32.mrf.mxu0  ;;  %v208_v27 = vpop.f32.mrf.mxu1  ;;  %v296_v30 = vadd.f32 %v747_v16, %v216_v22  ;;  %v300_v32 = vadd.f32 %v747_v16, %v226_v24 }
  0xb7   :  { %610 = vst [vmem:[#allocation3 + $0x20] sm:$0xff] %v583_v18   ;;  %v289_v28 = vadd.f32 %v747_v16, %v198_v26  ;;  %v293_v29 = vadd.f32 %v747_v16, %v208_v27 }
  0xb8   :  { %612 = vst [vmem:[#allocation3 + $0x30] sm:$0xff] %v593_v19   ;;  %v344_v40 = vadd.f32 %v550_v31, %v296_v30  ;;  %v348_v41 = vadd.f32 %v558_v33, %v300_v32 }
  0xb9   :  { %v337_v36 = vadd.f32 %v535_v11, %v289_v28  ;;  %v341_v37 = vadd.f32 %v543_v12, %v293_v29 }
  0xba   :  { %v376_v54 = vmul.f32 0.01, %v344_v40  ;;  %v380_v55 = vmul.f32 0.01, %v348_v41  ;;  %vm360_vm12 = vcmp.gt.f32.partialorder %v344_v40, 0.0  ;;  %vm364_vm13 = vcmp.gt.f32.partialorder %v348_v41, 0.0 }
  0xbb   :  { %vm353_vm10 = vcmp.gt.f32.partialorder %v337_v36, 0.0  ;;  %v369_v38 = vmul.f32 0.01, %v337_v36  ;;  %vm357_vm11 = vcmp.gt.f32.partialorder %v341_v37, 0.0  ;;  %v373_v39 = vmul.f32 0.01, %v341_v37 }
  0xbc   :  { %v392_v60 = vsel %vm360_vm12, %v344_v40, %v376_v54 }
  0xbd   :  { %v385_v46 = vsel %vm353_vm10, %v337_v36, %v369_v38  ;;  %v389_v47 = vsel %vm357_vm11, %v341_v37, %v373_v39  ;;  %v218_v48 = vpop.f32.mrf.mxu2  ;;  %v228_v49 = vpop.f32.mrf.mxu3 }
  0xbe   :  { %v568_v50 = vpack.c.bf16 %v385_v46, %v384_v44  ;;  %v578_v51 = vpack.c.bf16 %v389_v47, %v388_v45  ;;  %v297_v52 = vadd.f32 %v747_v16, %v218_v48  ;;  %v301_v53 = vadd.f32 %v747_v16, %v228_v49 }
  0xbf   :  { %v396_v16 = vsel %vm364_vm13, %v348_v41, %v380_v55 }
  0xc0   :  { %607 = vst [vmem:[#allocation3 + $0x8] sm:$0xff] %v568_v50   ;;  %v345_v56 = vadd.f32 %v551_v42, %v297_v52  ;;  %v349_v57 = vadd.f32 %v559_v43, %v301_v53 }
  0xc1   :  { %609 = vst [vmem:[#allocation3 + $0x18] sm:$0xff] %v578_v51  }
  0xc2   :  { %vm361_vm14 = vcmp.gt.f32.partialorder %v345_v56, 0.0  ;;  %v377_v58 = vmul.f32 0.01, %v345_v56  ;;  %vm365_vm15 = vcmp.gt.f32.partialorder %v349_v57, 0.0  ;;  %v381_v59 = vmul.f32 0.01, %v349_v57 }
  0xc4   :  { %v393_v61 = vsel %vm361_vm14, %v345_v56, %v377_v58  ;;  %v397_v62 = vsel %vm365_vm15, %v349_v57, %v381_v59 }
  0xc5   :  { %v588_v63 = vpack.c.bf16 %v393_v61, %v392_v60  ;;  %v598_v0 = vpack.c.bf16 %v397_v62, %v396_v16 }
  0xc7   :  { %611 = vst [vmem:[#allocation3 + $0x28] sm:$0xff] %v588_v63  }
  0xc8   :  { %613 = vst [vmem:[#allocation3 + $0x38] sm:$0xff] %v598_v0  }
  0xc9   :  { %442 = dma.vmem_to_hbm [thread:$0]  %s435_s10, 1024, %s437_s1, [#allocation4], %s669_s13, %s669_s13, %s670_s14  }
  0xca   :  { %666 = dma.done.wait [#allocation4], 1024  }
  0xcb   :  { %667 = vsyncadd [#allocation4], 4294966272 }
  0xcc   :  { %447 = vsyncpa [#allocation4], 1 }

</bundles_post_ra>
